<compile_context>
chip_gen: v7x
topology: tpu7x:2x2x1
jax: 0.10.0
libtpu: 0.0.40
codegen_flags: <defaults>
</compile_context>

<pallas_src>
import functools

import jax
import jax.numpy as jnp
from jax.experimental import pallas as pl
from jax.experimental.pallas import tpu as pltpu


def _refined_recip(d):
    """EUP approx reciprocal + one Newton-Raphson step (~f32 accuracy).

    Only applied to the tiny (tile_rows, 1) row-sum vector, so the refinement
    cost is negligible; the full-tile op becomes a multiply instead of a divide.
    """
    r = pl.reciprocal(d, approx=True)
    return r * (2.0 - d * r)


def _log_norm_kernel(x_ref, o_ref, *, eps, scale_factor, norm_1):
    x = x_ref[...].astype(jnp.float32)           # f32 math (v5e has no bf16 VPU/EUP)
    row_sum = jnp.sum(x, axis=1, keepdims=True)  # (rows, 1), XLU cross-lane reduce
    inv = _refined_recip(row_sum + eps) * scale_factor
    y = jnp.log1p(x * inv)                       # one full-tile mul + EUP log1p
    if norm_1:
        row_sum2 = jnp.sum(y, axis=1, keepdims=True)
        y = y * _refined_recip(row_sum2 + eps)
    o_ref[...] = y.astype(o_ref.dtype)


def _round_up(n, m):
    return ((n + m - 1) // m) * m


def _sublane_packing(dtype):
    return {4: 8, 2: 16, 1: 32}.get(jnp.dtype(dtype).itemsize, 8)


def log_normalization(x, norm_1: bool, *, eps: float = 1e-6,
                      scale_factor: float = 1e5, tile_rows: int | None = None,
                      target_block_bytes: int = 2 << 20):
    """Pallas TPU implementation of LogNormalization.forward for 2D x (N, D)."""
    # TODO(synk): rank>2 inputs (torch sums over dim=1 of any rank) would need a
    # transpose/reshape wrapper; only the common 2D (rows, features) case here.
    N, D = x.shape
    itemsize = jnp.dtype(x.dtype).itemsize
    sub = _sublane_packing(x.dtype)

    if tile_rows is None:
        # Size the row tile so the f32 block is ~target_block_bytes (big enough
        # to amortize the ~0.35us/step overhead, small enough for v7x VMEM).
        rows = max(sub, (target_block_bytes // (D * 4)) // sub * sub)
        tile_rows = min(rows, _round_up(N, sub))
    tile_rows = max(sub, (tile_rows // sub) * sub)

    # Ragged N: no host-side padding pass. The boundary block is partially
    # out-of-bounds; its stale tail rows are computed but masked on writeback,
    # and the math is row-local so valid rows are unaffected.
    grid = (pl.cdiv(N, tile_rows),)

    # VMEM budget: double-buffered in + out blocks plus ~4x f32 intermediates.
    block_io = tile_rows * D * itemsize
    block_f32 = tile_rows * D * 4
    vmem_needed = 2 * block_io + 2 * block_io + 4 * block_f32
    vmem_limit = int(min(max(int(vmem_needed * 1.5), 32 << 20), 48 << 20))

    kernel = functools.partial(
        _log_norm_kernel, eps=eps, scale_factor=scale_factor, norm_1=norm_1)

    return pl.pallas_call(
        kernel,
        out_shape=jax.ShapeDtypeStruct((N, D), x.dtype),
        grid_spec=pltpu.PrefetchScalarGridSpec(
            num_scalar_prefetch=0,
            grid=grid,
            in_specs=[pl.BlockSpec((tile_rows, D), lambda i: (i, 0))],
            out_specs=pl.BlockSpec((tile_rows, D), lambda i: (i, 0)),
        ),
        compiler_params=pltpu.CompilerParams(
            dimension_semantics=("parallel",),
            vmem_limit_bytes=vmem_limit),
    )(x)


def _reference(x, norm_1, eps=1e-6, scale_factor=1e5):
    xf = x.astype(jnp.float32)
    y = xf / (jnp.sum(xf, axis=1, keepdims=True) + eps) * scale_factor
    y = jnp.log1p(y)
    if norm_1:
        y = y / (jnp.sum(y, axis=1, keepdims=True) + eps)
    return y.astype(x.dtype)


if __name__ == "__main__":
    key = jax.random.PRNGKey(0)
    k1, k2, k3 = jax.random.split(key, 3)

    # Small count-like positive inputs.
    #  - (16, 256): single aligned block.
    #  - (250, 384): ragged N, single boundary block (masked writeback path).
    #  - (20, 256) with tile_rows=8: multi-step grid with a partial last block.
    cases = [
        (jax.random.uniform(k1, (16, 256), jnp.float32, 0.0, 10.0), None),
        (jax.random.uniform(k2, (250, 384), jnp.float32, 0.0, 10.0), None),
        (jax.random.uniform(k3, (20, 256), jnp.float32, 0.0, 10.0), 8),
    ]

    for x, tr in cases:
        kwargs = {} if tr is None else {"tile_rows": tr}
        out_false = jax.block_until_ready(
            log_normalization(x, norm_1=False, **kwargs))
        out_true = jax.block_until_ready(
            log_normalization(x, norm_1=True, **kwargs))

        ref_false = _reference(x, False)
        ref_true = _reference(x, True)

        assert out_false.shape == x.shape and out_true.shape == x.shape
        assert jnp.allclose(out_false, ref_false, rtol=1e-5, atol=1e-5), (
            "norm_1=False mismatch")
        assert jnp.allclose(out_true, ref_true, rtol=1e-5, atol=1e-6), (
            "norm_1=True mismatch")

    print("KERNEL_OK")
</pallas_src>

<mosaic_0001>
module attributes {stable_mosaic.version = 11 : i64} {
  func.func @_log_norm_kernel(%arg0: i32, %arg1: memref<16x256xf32, #tpu.memory_space<vmem>>, %arg2: memref<16x256xf32, #tpu.memory_space<vmem>>) attributes {dimension_semantics = [#tpu.dimension_semantics<parallel>], iteration_bounds = array<i64: 1>, scalar_prefetch = 0 : i64, scratch_operands = 0 : i64, tpu.core_type = #tpu.core_type<tc>, window_params = [{transform_indices = @transform_0, window_bounds = array<i64: 16, 256>}, {transform_indices = @transform_1, window_bounds = array<i64: 16, 256>}]} {
    %c0 = arith.constant 0 : index
    %c0_0 = arith.constant 0 : index
    %0 = vector.load %arg1[%c0, %c0_0] : memref<16x256xf32, #tpu.memory_space<vmem>>, vector<16x256xf32>
    %cst = arith.constant dense<0.000000e+00> : vector<16xf32>
    %1 = vector.multi_reduction <add>, %0, %cst [1] : vector<16x256xf32> to vector<16xf32>
    %2 = vector.shape_cast %1 : vector<16xf32> to vector<16x1xf32>
    %cst_1 = arith.constant 9.99999997E-7 : f32
    %3 = vector.broadcast %cst_1 : f32 to vector<16x1xf32>
    %4 = arith.addf %2, %3 : vector<16x1xf32>
    %5 = tpu.reciprocal %4 {approx = true} : vector<16x1xf32> -> vector<16x1xf32>
    %6 = arith.mulf %4, %5 : vector<16x1xf32>
    %cst_2 = arith.constant 2.000000e+00 : f32
    %7 = vector.broadcast %cst_2 : f32 to vector<16x1xf32>
    %8 = arith.subf %7, %6 : vector<16x1xf32>
    %9 = arith.mulf %5, %8 : vector<16x1xf32>
    %cst_3 = arith.constant 1.000000e+05 : f32
    %10 = vector.broadcast %cst_3 : f32 to vector<16x1xf32>
    %11 = arith.mulf %9, %10 : vector<16x1xf32>
    %12 = vector.broadcast %11 : vector<16x1xf32> to vector<16x256xf32>
    %13 = arith.mulf %0, %12 : vector<16x256xf32>
    %14 = math.log1p %13 : vector<16x256xf32>
    %c0_4 = arith.constant 0 : index
    %c0_5 = arith.constant 0 : index
    %15 = vector.load %arg2[%c0_4, %c0_5] : memref<16x256xf32, #tpu.memory_space<vmem>>, vector<16x256xf32>
    tpu.vector_store %arg2[%c0_4, %c0_5], %14 {strides = array<i32>} : memref<16x256xf32, #tpu.memory_space<vmem>>, vector<16x256xf32>,
    return
  }
  func.func @transform_0(%arg0: i32) -> (i32, i32) {
    %c0_i32 = arith.constant 0 : i32
    %c0_i32_0 = arith.constant 0 : i32
    return %arg0, %c0_i32 : i32, i32
  }
  func.func @transform_1(%arg0: i32) -> (i32, i32) {
    %c0_i32 = arith.constant 0 : i32
    %c0_i32_0 = arith.constant 0 : i32
    return %arg0, %c0_i32 : i32, i32
  }
}

</mosaic_0001>

<bundles_post_ra>
// kernel: tpu_custom_call.1
= control target key start
LH: loop header
LB: loop body
LE: loop exit
PB: predicated region body
PF: predicated region fallthrough
CT: control target
= control target key end

     0   :  { %6 = vsyncpa [#allocation3], 0  ;;  %s214_s0 = inlined_call_operand.hbm [shape: f32[16,256], index: 0, kind: input, shape index: {}]   ;;  %s215_s1 = inlined_call_operand.hbm [shape: f32[16,256], index: 1, kind: output, shape index: {}]  }
   0x1   :  { %7 = vsyncpa [#allocation4], 0  ;;  %s170_s6 = smov [#allocation2]   ;;  %s122_s10 = scalar_lea.hbm %s214_s0, 512 }
   0x2   :  { %s13_s7 = sshll.u32 %s170_s6, 4  ;;  %p123_p0 = scmp.ne.s32.totalorder %s214_s0, %s122_s10  ;;  %s14_s7 = int_to_ptr.vmem [resolvable:$true] %s13_s7 }
   0x3   :  { %p126_p1 = scmp.lt.u32.totalorder %s122_s10, %s214_s0 }
   0x5   :  { %p128_p2 = pnand %p126_p1, %p123_p0 }
   0x7   :  { %131 = shalt.err (!%p128_p2)
}
   0x8   :  { %s132_s15 = scalar_lea.vmem %s14_s7, 512  ;;  %p137_p4 = scmp.lt.s32.totalorder %s14_s7, %s14_s7 }
   0x9   :  { %p133_p3 = scmp.ne.s32.totalorder %s14_s7, %s132_s15  ;;  %p138_p5 = scmp.lt.s32.totalorder %s132_s15, %s132_s15 }
   0xb   :  { %p139_p6 = por %p138_p5, %p137_p4 }
   0xd   :  { %p140_p7 = pnand %p139_p6, %p133_p3 }
   0xf   :  { %143 = shalt.err (!%p140_p7)
}
  0x10   :  { %s171_s16 = smov 256   ;;  %s172_s17 = smov 16  }
  0x11   :  { %19 = dma.hbm_to_vmem [thread:$0]  %s214_s0, 512, %s14_s7, [#allocation3], %s171_s16, %s171_s16, %s172_s17  }
  0x12   :  { %166 = dma.done.wait [#allocation3], 512  }
  0x13   :  { %167 = vsyncadd [#allocation3], 4294966784  ;;  %v23_v0 = vld [vmem:[#allocation2] sm:$0xff]  ;;  %v24_v1 = vld [vmem:[#allocation2 + $0x8] sm:$0xff]  ;;  %s173_s0 = smov [#allocation5]  }
  0x14   :  { %v25_v2 = vld [vmem:[#allocation2 + $0x10] sm:$0xff]  ;;  %v27_v3 = vadd.f32 %v24_v1, %v23_v0  ;;  %v26_v4 = vld [vmem:[#allocation2 + $0x18] sm:$0xff]  ;;  %s94_s20 = sshll.u32 %s173_s0, 4  ;;  %s95_s20 = int_to_ptr.vmem [resolvable:$true] %s94_s20 }
  0x15   :  { %v30_v5 = vadd.f32 %v26_v4, %v25_v2  ;;  %s144_s21 = scalar_lea.vmem %s95_s20, 512  ;;  %p149_p9 = scmp.lt.s32.totalorder %s95_s20, %s95_s20 }
  0x16   :  { %28 = vadd.xlane.f32.xlu0 %v27_v3  ;;  %p145_p8 = scmp.ne.s32.totalorder %s95_s20, %s144_s21  ;;  %p150_p10 = scmp.lt.s32.totalorder %s144_s21, %s144_s21 }
  0x18   :  { %p151_p11 = por %p150_p10, %p149_p9 }
  0x1a   :  { %31 = vadd.xlane.f32.xlu0 %v30_v5  ;;  %p152_p12 = pnand %p151_p11, %p145_p8 }
  0xa3   :  { %v29_v6 = vpop.xlane.xlu0 %28 }
  0xa4   :  { %v33_v7 = vadd.f32 1e-06, %v29_v6 }
  0xa6   :  { %110 = vrcp.f32 %v33_v7 }
  0xa7   :  { %v32_v8 = vpop.xlane.xlu0 %31 }
  0xa8   :  { %v34_v9 = vadd.f32 1e-06, %v32_v8 }
  0xaa   :  { %112 = vrcp.f32 %v34_v9 }
  0xb0   :  { %v111_v10 = vpop.eup %110 }
  0xb1   :  { %v37_v11 = vmul.f32 %v111_v10, %v33_v7 }
  0xb3   :  { %v39_v12 = vsub.f32 2.0, %v37_v11 }
  0xb4   :  { %v113_v13 = vpop.eup %112 }
  0xb5   :  { %v41_v14 = vmul.f32 %v111_v10, %v39_v12  ;;  %v38_v15 = vmul.f32 %v113_v13, %v34_v9 }
  0xb7   :  { %v43_v16 = vmul.f32 100000.0, %v41_v14  ;;  %v40_v17 = vsub.f32 2.0, %v38_v15 }
  0xb9   :  { %v45_v18 = vmul.f32 %v43_v16, %v23_v0  ;;  %v46_v19 = vmul.f32 %v43_v16, %v24_v1  ;;  %v42_v20 = vmul.f32 %v113_v13, %v40_v17 }
  0xbb   :  { %v49_v21 = vadd.f32 1.0, %v45_v18  ;;  %v58_v22 = vadd.f32 1.0, %v46_v19  ;;  %v44_v23 = vmul.f32 100000.0, %v42_v20  ;;  %v52_v26 = vmul.f32 -0.5, %v45_v18 }
  0xbc   :  { %v61_v29 = vmul.f32 -0.5, %v46_v19  ;;  %v55_v32 = vand.u32 2147483647, %v45_v18  ;;  %v64_v35 = vand.u32 2147483647, %v46_v19 }
  0xbd   :  { %114 = vlog2.f32 %v49_v21  ;;  %v47_v24 = vmul.f32 %v44_v23, %v25_v2  ;;  %v48_v25 = vmul.f32 %v44_v23, %v26_v4  ;;  %v53_v30 = vadd.f32 1.0, %v52_v26 }
  0xbe   :  { %116 = vlog2.f32 %v58_v22  ;;  %v62_v33 = vadd.f32 1.0, %v61_v29  ;;  %vm56_vm0 = vcmp.lt.f32.partialorder %v55_v32, 0.0004427343  ;;  %vm65_vm1 = vcmp.lt.f32.partialorder %v64_v35, 0.0004427343 }
  0xbf   :  { %v67_v27 = vadd.f32 1.0, %v47_v24  ;;  %v76_v28 = vadd.f32 1.0, %v48_v25  ;;  %v70_v31 = vmul.f32 -0.5, %v47_v24  ;;  %v79_v34 = vmul.f32 -0.5, %v48_v25 }
  0xc0   :  { %v54_v39 = vmul.f32 %v53_v30, %v45_v18  ;;  %v63_v42 = vmul.f32 %v62_v33, %v46_v19  ;;  %v73_v45 = vand.u32 2147483647, %v47_v24  ;;  %v82_v47 = vand.u32 2147483647, %v48_v25 }
  0xc1   :  { %118 = vlog2.f32 %v67_v27  ;;  %v71_v40 = vadd.f32 1.0, %v70_v31  ;;  %v80_v43 = vadd.f32 1.0, %v79_v34 }
  0xc2   :  { %120 = vlog2.f32 %v76_v28  ;;  %vm74_vm2 = vcmp.lt.f32.partialorder %v73_v45, 0.0004427343  ;;  %vm83_vm3 = vcmp.lt.f32.partialorder %v82_v47, 0.0004427343 }
  0xc3   :  { %v72_v51 = vmul.f32 %v71_v40, %v47_v24  ;;  %v81_v53 = vmul.f32 %v80_v43, %v48_v25 }
  0xc7   :  { %v115_v36 = vpop.eup %114 }
  0xc8   :  { %v117_v37 = vpop.eup %116  ;;  %v51_v38 = vmul.f32 0.6931472, %v115_v36 }
  0xc9   :  { %v60_v41 = vmul.f32 0.6931472, %v117_v37 }
  0xca   :  { %v57_v44 = vsel %vm56_vm0, %v54_v39, %v51_v38 }
  0xcb   :  { %v66_v46 = vsel %vm65_vm1, %v63_v42, %v60_v41  ;;  %85 = vst [vmem:[#allocation5] sm:$0xff] %v57_v44  ;;  %v119_v48 = vpop.eup %118 }
  0xcc   :  { %86 = vst [vmem:[#allocation5 + $0x8] sm:$0xff] %v66_v46  ;;  %v121_v49 = vpop.eup %120  ;;  %v69_v50 = vmul.f32 0.6931472, %v119_v48 }
  0xcd   :  { %v78_v52 = vmul.f32 0.6931472, %v121_v49 }
  0xce   :  { %v75_v54 = vsel %vm74_vm2, %v72_v51, %v69_v50 }
  0xcf   :  { %v84_v55 = vsel %vm83_vm3, %v81_v53, %v78_v52  ;;  %87 = vst [vmem:[#allocation5 + $0x10] sm:$0xff] %v75_v54 }
  0xd0   :  { %88 = vst [vmem:[#allocation5 + $0x18] sm:$0xff] %v84_v55 }
  0xd1   :  { %155 = shalt.err (!%p152_p12)
}
  0xd2   :  { %s156_s24 = scalar_lea.hbm %s215_s1, 512 }
  0xd3   :  { %p157_p13 = scmp.ne.s32.totalorder %s215_s1, %s156_s24  ;;  %p160_p0 = scmp.lt.u32.totalorder %s156_s24, %s215_s1 }
  0xd5   :  { %p162_p1 = pnand %p160_p0, %p157_p13 }
  0xd7   :  { %165 = shalt.err (!%p162_p1)
}
  0xd8   :  { %100 = dma.vmem_to_hbm [thread:$0]  %s95_s20, 512, %s215_s1, [#allocation4], %s171_s16, %s171_s16, %s172_s17  }
  0xd9   :  { %168 = dma.done.wait [#allocation4], 512  }
  0xda   :  { %169 = vsyncadd [#allocation4], 4294966784 }
  0xdb   :  { %104 = vsyncpa [#allocation3], 1 }
  0xdc   :  { %105 = vsyncpa [#allocation4], 1 }

</bundles_post_ra>
